<compile_context>
chip_gen: v7x
topology: tpu7x:2x2x1
jax: 0.10.0
libtpu: 0.0.40
codegen_flags: <defaults>
</compile_context>

<pallas_src>
import functools

import jax
import jax.numpy as jnp
from jax.experimental import pallas as pl
from jax.experimental.pallas import tpu as pltpu

HIDDEN = 50        # logical hidden width (nn.Linear(2, 50))
HIDDEN_PAD = 56    # sublane-aligned hidden width (multiple of 8)


def _round_up(x, m):
    return ((x + m - 1) // m) * m


def mlp_kernel(xt_ref, w1_ref, b1_ref, w2_ref, b2_ref, o_ref):
    # xt_ref: (2, bb)            w1_ref: (HIDDEN_PAD, 2)   b1_ref: (HIDDEN_PAD, 1)
    # w2_ref: (HIDDEN_PAD, 1)    b2_ref: (1, 1)            o_ref:  (1, bb)
    x0 = xt_ref[0:1, :]                       # (1, bb) lane-dense
    x1 = xt_ref[1:2, :]                       # (1, bb)
    w1 = w1_ref[...]                          # (HIDDEN_PAD, 2)

    # fc1: K=2 contraction as two broadcast-FMAs on the VPU, bias as the
    # accumulator init.  h is (hidden on sublanes, batch on lanes).
    h = w1[:, 0:1] * x0 + w1[:, 1:2] * x1 + b1_ref[...]   # (HIDDEN_PAD, bb)
    h = jnp.maximum(h, 0.0)                   # padded hidden rows stay exactly 0

    # fc2: N=1 output as a weighted sublane reduce -> lane-dense (1, bb) row.
    # Padded hidden rows carry zero weight so they contribute nothing.
    y = jnp.sum(h * w2_ref[...], axis=0, keepdims=True) + b2_ref[...]
    o_ref[...] = jnp.maximum(y, 0.0)          # compact store: 4 B per batch row


def pack_params(w1, b1, w2, b2):
    """Zero-pad params into the (hidden-on-sublanes) kernel layout."""
    h = w1.shape[1]                                       # 50
    w1p = jnp.zeros((HIDDEN_PAD, 2), jnp.float32).at[:h, :].set(w1.T)
    b1p = jnp.zeros((HIDDEN_PAD, 1), jnp.float32).at[:h, 0].set(b1)
    w2p = jnp.zeros((HIDDEN_PAD, 1), jnp.float32).at[:h, :].set(w2)
    b2p = jnp.asarray(b2, jnp.float32).reshape(1, 1)
    return w1p, b1p, w2p, b2p


@functools.partial(jax.jit, static_argnames=("block_b",))
def net_forward(x, w1p, b1p, w2p, b2p, *, block_b=8192):
    B = x.shape[0]

    # Batch tile: multiple of 128 (lane axis).  Keep >=2 grid steps for large
    # batches so dimension_semantics=("parallel",) shards across v7x's 2 TCs.
    target = _round_up(B, 128)
    bb = max(128, (min(block_b, target) // 128) * 128)
    if target > 128 and target // bb < 2:
        bb = _round_up((target + 1) // 2, 128)
    b_pad = _round_up(target, bb)
    grid = (b_pad // bb,)

    # Lane-dense input: two contiguous rows of length b_pad (batch on lanes).
    xt = jnp.zeros((2, b_pad), jnp.float32).at[:, :B].set(x.T)

    flops = 2 * b_pad * 2 * HIDDEN + 2 * b_pad * HIDDEN          # fc1 + fc2
    bytes_accessed = 4 * (2 * b_pad                               # x (transposed)
                          + HIDDEN_PAD * 2 + HIDDEN_PAD           # w1, b1
                          + HIDDEN_PAD + 1                        # w2, b2
                          + b_pad)                                # compact output

    out = pl.pallas_call(
        mlp_kernel,
        out_shape=jax.ShapeDtypeStruct((1, b_pad), jnp.float32),
        grid=grid,
        in_specs=[
            pl.BlockSpec((2, bb), lambda i: (0, i)),              # x^T: tiled on lanes
            pl.BlockSpec((HIDDEN_PAD, 2), lambda i: (0, 0)),      # w1: VMEM-resident
            pl.BlockSpec((HIDDEN_PAD, 1), lambda i: (0, 0)),      # b1
            pl.BlockSpec((HIDDEN_PAD, 1), lambda i: (0, 0)),      # w2 (column form)
            pl.BlockSpec((1, 1), lambda i: (0, 0)),               # b2
        ],
        out_specs=pl.BlockSpec((1, bb), lambda i: (0, i)),        # compact lane-dense row
        compiler_params=pltpu.CompilerParams(
            dimension_semantics=("parallel",),                    # 2 TCs on v7x
            vmem_limit_bytes=32 * 1024 * 1024,                    # explicit budget (v7x safe)
        ),
        cost_estimate=pl.CostEstimate(
            flops=flops, transcendentals=0, bytes_accessed=bytes_accessed),
    )(xt, w1p, b1p, w2p, b2p)

    # Drop batch padding; return (B, 1) like the PyTorch module.
    return out[0, :B].reshape(B, 1)


def init_params(key):
    # Deterministic init mimicking nn.Linear's default (uniform in +-1/sqrt(fan_in)).
    k1, k2, k3, k4 = jax.random.split(key, 4)
    bound1 = 1.0 / jnp.sqrt(2.0)
    bound2 = 1.0 / jnp.sqrt(50.0)
    w1 = jax.random.uniform(k1, (2, HIDDEN), jnp.float32, -bound1, bound1)  # fc1.weight.T
    b1 = jax.random.uniform(k2, (HIDDEN,), jnp.float32, -bound1, bound1)    # fc1.bias
    w2 = jax.random.uniform(k3, (HIDDEN, 1), jnp.float32, -bound2, bound2)  # fc2.weight.T
    b2 = jax.random.uniform(k4, (1,), jnp.float32, -bound2, bound2)         # fc2.bias
    return w1, b1, w2, b2


if __name__ == "__main__":
    key = jax.random.PRNGKey(0)
    kx, kp = jax.random.split(key)

    B = 8  # small XOR-style batch
    x = jax.random.uniform(kx, (B, 2), jnp.float32)
    w1, b1, w2, b2 = init_params(kp)
    w1p, b1p, w2p, b2p = pack_params(w1, b1, w2, b2)

    out = net_forward(x, w1p, b1p, w2p, b2p)
    jax.block_until_ready(out)

    # Cross-check against a plain JAX reference of the PyTorch forward pass.
    ref = jnp.maximum(jnp.maximum(x @ w1 + b1[None, :], 0.0) @ w2 + b2[None, :], 0.0)
    assert out.shape == (B, 1)
    assert jnp.allclose(out, ref, atol=1e-5, rtol=1e-5), "mismatch vs reference"

    print("KERNEL_OK")
</pallas_src>

<mosaic_0001>
module attributes {stable_mosaic.version = 11 : i64} {
  func.func @mlp_kernel(%arg0: i32, %arg1: memref<2x128xf32, #tpu.memory_space<vmem>>, %arg2: memref<56x2xf32, #tpu.memory_space<vmem>>, %arg3: memref<56x1xf32, #tpu.memory_space<vmem>>, %arg4: memref<56x1xf32, #tpu.memory_space<vmem>>, %arg5: memref<1x1xf32, #tpu.memory_space<vmem>>, %arg6: memref<1x128xf32, #tpu.memory_space<vmem>>) attributes {dimension_semantics = [#tpu.dimension_semantics<parallel>], iteration_bounds = array<i64: 1>, scalar_prefetch = 0 : i64, scratch_operands = 0 : i64, tpu.core_type = #tpu.core_type<tc>, window_params = [{transform_indices = @transform_0, window_bounds = array<i64: 2, 128>}, {pipeline_mode = #tpu.pipeline_mode<synchronous>, transform_indices = @transform_1, window_bounds = array<i64: 56, 2>}, {pipeline_mode = #tpu.pipeline_mode<synchronous>, transform_indices = @transform_2, window_bounds = array<i64: 56, 1>}, {pipeline_mode = #tpu.pipeline_mode<synchronous>, transform_indices = @transform_3, window_bounds = array<i64: 56, 1>}, {pipeline_mode = #tpu.pipeline_mode<synchronous>, transform_indices = @transform_4, window_bounds = array<i64: 1, 1>}, {transform_indices = @transform_5, window_bounds = array<i64: 1, 128>}]} {
    %c0 = arith.constant 0 : index
    %c0_0 = arith.constant 0 : index
    %0 = vector.load %arg1[%c0, %c0_0] : memref<2x128xf32, #tpu.memory_space<vmem>>, vector<1x128xf32>
    %c1 = arith.constant 1 : index
    %c0_1 = arith.constant 0 : index
    %1 = vector.load %arg1[%c1, %c0_1] : memref<2x128xf32, #tpu.memory_space<vmem>>, vector<1x128xf32>
    %c0_2 = arith.constant 0 : index
    %c0_3 = arith.constant 0 : index
    %2 = vector.load %arg2[%c0_2, %c0_3] : memref<56x2xf32, #tpu.memory_space<vmem>>, vector<56x2xf32>
    %3 = vector.extract_strided_slice %2 {offsets = [0, 0], sizes = [56, 1], strides = [1, 1]} : vector<56x2xf32> to vector<56x1xf32>
    %4 = vector.broadcast %3 : vector<56x1xf32> to vector<56x128xf32>
    %5 = vector.broadcast %0 : vector<1x128xf32> to vector<56x128xf32>
    %6 = arith.mulf %4, %5 : vector<56x128xf32>
    %7 = vector.extract_strided_slice %2 {offsets = [0, 1], sizes = [56, 1], strides = [1, 1]} : vector<56x2xf32> to vector<56x1xf32>
    %8 = vector.broadcast %7 : vector<56x1xf32> to vector<56x128xf32>
    %9 = vector.broadcast %1 : vector<1x128xf32> to vector<56x128xf32>
    %10 = arith.mulf %8, %9 : vector<56x128xf32>
    %11 = arith.addf %6, %10 : vector<56x128xf32>
    %c0_4 = arith.constant 0 : index
    %c0_5 = arith.constant 0 : index
    %12 = vector.load %arg3[%c0_4, %c0_5] : memref<56x1xf32, #tpu.memory_space<vmem>>, vector<56x1xf32>
    %13 = vector.broadcast %12 : vector<56x1xf32> to vector<56x128xf32>
    %14 = arith.addf %11, %13 : vector<56x128xf32>
    %cst = arith.constant 0.000000e+00 : f32
    %15 = vector.broadcast %cst : f32 to vector<56x128xf32>
    %16 = arith.maximumf %14, %15 : vector<56x128xf32>
    %c0_6 = arith.constant 0 : index
    %c0_7 = arith.constant 0 : index
    %17 = vector.load %arg4[%c0_6, %c0_7] : memref<56x1xf32, #tpu.memory_space<vmem>>, vector<56x1xf32>
    %18 = vector.broadcast %17 : vector<56x1xf32> to vector<56x128xf32>
    %19 = arith.mulf %16, %18 : vector<56x128xf32>
    %cst_8 = arith.constant dense<0.000000e+00> : vector<128xf32>
    %20 = vector.multi_reduction <add>, %19, %cst_8 [0] : vector<56x128xf32> to vector<128xf32>
    %21 = vector.shape_cast %20 : vector<128xf32> to vector<1x128xf32>
    %c0_9 = arith.constant 0 : index
    %c0_10 = arith.constant 0 : index
    %22 = vector.load %arg5[%c0_9, %c0_10] : memref<1x1xf32, #tpu.memory_space<vmem>>, vector<1x1xf32>
    %23 = vector.broadcast %22 : vector<1x1xf32> to vector<1x128xf32>
    %24 = arith.addf %21, %23 : vector<1x128xf32>
    %cst_11 = arith.constant 0.000000e+00 : f32
    %25 = vector.broadcast %cst_11 : f32 to vector<1x128xf32>
    %26 = arith.maximumf %24, %25 : vector<1x128xf32>
    %c0_12 = arith.constant 0 : index
    %c0_13 = arith.constant 0 : index
    %27 = vector.load %arg6[%c0_12, %c0_13] : memref<1x128xf32, #tpu.memory_space<vmem>>, vector<1x128xf32>
    tpu.vector_store %arg6[%c0_12, %c0_13], %26 {strides = array<i32>} : memref<1x128xf32, #tpu.memory_space<vmem>>, vector<1x128xf32>,
    return
  }
  func.func @transform_0(%arg0: i32) -> (i32, i32) {
    %c0_i32 = arith.constant 0 : i32
    %c0_i32_0 = arith.constant 0 : i32
    return %c0_i32, %arg0 : i32, i32
  }
  func.func @transform_1(%arg0: i32) -> (i32, i32) {
    %c0_i32 = arith.constant 0 : i32
    %c0_i32_0 = arith.constant 0 : i32
    %c0_i32_1 = arith.constant 0 : i32
    return %c0_i32, %c0_i32_0 : i32, i32
  }
  func.func @transform_2(%arg0: i32) -> (i32, i32) {
    %c0_i32 = arith.constant 0 : i32
    %c0_i32_0 = arith.constant 0 : i32
    %c0_i32_1 = arith.constant 0 : i32
    return %c0_i32, %c0_i32_0 : i32, i32
  }
  func.func @transform_3(%arg0: i32) -> (i32, i32) {
    %c0_i32 = arith.constant 0 : i32
    %c0_i32_0 = arith.constant 0 : i32
    %c0_i32_1 = arith.constant 0 : i32
    return %c0_i32, %c0_i32_0 : i32, i32
  }
  func.func @transform_4(%arg0: i32) -> (i32, i32) {
    %c0_i32 = arith.constant 0 : i32
    %c0_i32_0 = arith.constant 0 : i32
    %c0_i32_1 = arith.constant 0 : i32
    return %c0_i32, %c0_i32_0 : i32, i32
  }
  func.func @transform_5(%arg0: i32) -> (i32, i32) {
    %c0_i32 = arith.constant 0 : i32
    %c0_i32_0 = arith.constant 0 : i32
    return %c0_i32, %arg0 : i32, i32
  }
}

</mosaic_0001>

<bundles_post_ra>
// kernel: net_forward.1
= control target key start
LH: loop header
LB: loop body
LE: loop exit
PB: predicated region body
PF: predicated region fallthrough
CT: control target
= control target key end

     0   :  { %v270_v0 = vmov 1   ;;  %v271_v1 = vmov 0   ;;  %s377_s1 = inlined_call_operand.vmem [shape: f32[56,2], index: 1, kind: input, shape index: {}]   ;;  %s378_s4 = inlined_call_operand.<no memory space> [shape: f32[1,1], index: 4, kind: input, shape index: {}]   ;;  %s379_s2 = inlined_call_operand.vmem [shape: f32[56,1], index: 2, kind: input, shape index: {}]   ;;  %s380_s3 = inlined_call_operand.vmem [shape: f32[56,1], index: 3, kind: input, shape index: {}]   ;;  %s381_s0 = inlined_call_operand.vmem [shape: f32[2,128], index: 0, kind: input, shape index: {}]   ;;  %s382_s5 = inlined_call_operand.vmem [shape: f32[1,128], index: 5, kind: output, shape index: {}]  }
   0x1   :  { %262 = vset.pattern.permute.xlu0 %v270_v0  ;;  %261 = vset.pattern.permute.xlu1 %v271_v1  ;;  %v26_v2 = vld [vmem:[%s377_s1 + $0x10] sm:$0xff]  ;;  %v24_v3 = vld [vmem:[%s377_s1] sm:$0xff]  ;;  %v10_v4 = vstv %s378_s4  ;;  %v27_v5 = vld [vmem:[%s377_s1 + $0x18] sm:$0xff] }
   0x2   :  { %43 = vperm.xlu1 %261, %v26_v2   ;;  %78 = vperm.xlu0 %262, %v24_v3   ;;  %11 = vst [vmem:[#allocation2] sm:$0x1] %v10_v4  ;;  %v29_v6 = vld [vmem:[%s377_s1 + $0x28] sm:$0xff]  ;;  %v123_v8 = vld [vmem:[%s379_s2] sm:$0xff]  ;;  %v125_v11 = vld [vmem:[%s379_s2 + $0x10] sm:$0xff] }
   0x3   :  { %v25_v7 = vld [vmem:[%s377_s1 + $0x8] sm:$0xff]  ;;  %v28_v10 = vld [vmem:[%s377_s1 + $0x20] sm:$0xff]  ;;  %v126_v14 = vld [vmem:[%s379_s2 + $0x18] sm:$0xff] }
   0x4   :  { %v124_v9 = vld [vmem:[%s379_s2 + $0x8] sm:$0xff]  ;;  %v127_v13 = vld [vmem:[%s379_s2 + $0x20] sm:$0xff]  ;;  %v129_v17 = vld [vmem:[%s379_s2 + $0x30] sm:$0xff] }
   0x5   :  { %v180_v12 = vld [vmem:[%s380_s3 + $0x8] sm:$0xff]  ;;  %v179_v16 = vld [vmem:[%s380_s3] sm:$0xff]  ;;  %v30_v18 = vld [vmem:[%s377_s1 + $0x30] sm:$0xff] }
   0x6   :  { %48 = vperm.xlu1 %261, %v27_v5   ;;  %90 = vperm.xlu0 %262, %v27_v5   ;;  %v128_v15 = vld [vmem:[%s379_s2 + $0x28] sm:$0xff]  ;;  %v181_v21 = vld [vmem:[%s380_s3 + $0x10] sm:$0xff]  ;;  %v182_v22 = vld [vmem:[%s380_s3 + $0x18] sm:$0xff] }
   0x7   :  { %v184_v19 = vld [vmem:[%s380_s3 + $0x28] sm:$0xff]  ;;  %v183_v23 = vld [vmem:[%s380_s3 + $0x20] sm:$0xff]  ;;  %v185_v24 = vld [vmem:[%s380_s3 + $0x30] sm:$0xff] }
   0x8   :  { %v257_v42 = vld [vmem:[%s381_s0] ss:$0 sm:$0xff]  ;;  %v258_v43 = vld [vmem:[%s381_s0 + $0x1] ss:$0 sm:$0xff] }
   0x9   :  { %v240_v20 = vld [vmem:[#allocation2] sm:$0x1] }
   0xa   :  { %263 = vset.pattern.permute.xlu1 %v270_v0  ;;  %98 = vperm.xlu0 %262, %v29_v6  }
   0xb   :  { %82 = vperm.xlu1 %263, %v25_v7  }
   0xe   :  { %267 = vset.pattern.permute.xlu0 %v271_v1 }
   0xf   :  { %86 = vperm.xlu1 %263, %v26_v2   ;;  %33 = vperm.xlu0 %267, %v24_v3  }
  0x13   :  { %264 = vset.pattern.permute.xlu1 %v271_v1  ;;  %38 = vperm.xlu0 %267, %v25_v7  }
  0x14   :  { %132 = vperm.xlu1 %264, %v123_v8  }
  0x17   :  { %137 = vperm.xlu0 %267, %v124_v9  }
  0x18   :  { %53 = vperm.xlu1 %264, %v28_v10  }
  0x1b   :  { %142 = vperm.xlu0 %267, %v125_v11  }
  0x1c   :  { %265 = vset.pattern.permute.xlu1 %v270_v0 }
  0x1d   :  { %94 = vperm.xlu1 %265, %v28_v10  }
  0x1f   :  { %193 = vperm.xlu0 %267, %v180_v12  }
  0x21   :  { %266 = vset.pattern.permute.xlu1 %v271_v1 }
  0x22   :  { %58 = vperm.xlu1 %266, %v29_v6  }
  0x23   :  { %152 = vperm.xlu0 %267, %v127_v13  }
  0x26   :  { %147 = vperm.xlu1 %266, %v126_v14  }
  0x27   :  { %157 = vperm.xlu0 %267, %v128_v15  }
  0x2a   :  { %188 = vperm.xlu1 %266, %v179_v16  }
  0x2b   :  { %162 = vperm.xlu0 %267, %v129_v17  }
  0x2e   :  { %63 = vperm.xlu1 %266, %v30_v18  }
  0x2f   :  { %213 = vperm.xlu0 %267, %v184_v19  }
  0x32   :  { %268 = vset.pattern.permute.xlu1 %v270_v0 }
  0x33   :  { %102 = vperm.xlu1 %268, %v30_v18   ;;  %243 = vperm.xlu0 %267, %v240_v20  }
  0x37   :  { %269 = vset.pattern.permute.xlu1 %v271_v1 }
  0x38   :  { %198 = vperm.xlu1 %269, %v181_v21  }
  0x3c   :  { %203 = vperm.xlu1 %269, %v182_v22  }
  0x40   :  { %208 = vperm.xlu1 %269, %v183_v23  }
  0x44   :  { %218 = vperm.xlu1 %269, %v185_v24  }
  0x81   :  { %v44_v25 = vpop.permute.xlu1 %43  ;;  %v79_v26 = vpop.permute.xlu0 %78 }
  0x82   :  { %v109_v45 = vmul.f32 %v258_v43, %v79_v26  ;;  %v72_v53 = vmul.f32 %v257_v42, %v44_v25 }
  0x85   :  { %v49_v27 = vpop.permute.xlu1 %48  ;;  %v91_v28 = vpop.permute.xlu0 %90 }
  0x86   :  { %v73_v55 = vmul.f32 %v257_v42, %v49_v27  ;;  %v112_v56 = vmul.f32 %v258_v43, %v91_v28 }
  0x88   :  { %v119_v1 = vadd.f32 %v112_v56, %v73_v55 }
  0x89   :  { %v99_v29 = vpop.permute.xlu0 %98 }
  0x8a   :  { %v83_v30 = vpop.permute.xlu1 %82  ;;  %v114_v2 = vmul.f32 %v258_v43, %v99_v29 }
  0x8b   :  { %v110_v48 = vmul.f32 %v258_v43, %v83_v30 }
  0x8e   :  { %v87_v31 = vpop.permute.xlu1 %86  ;;  %v34_v32 = vpop.permute.xlu0 %33 }
  0x8f   :  { %v70_v46 = vmul.f32 %v257_v42, %v34_v32  ;;  %v111_v49 = vmul.f32 %v258_v43, %v87_v31 }
  0x91   :  { %v116_v52 = vadd.f32 %v109_v45, %v70_v46  ;;  %v118_v57 = vadd.f32 %v111_v49, %v72_v53 }
  0x92   :  { %v39_v34 = vpop.permute.xlu0 %38 }
  0x93   :  { %v133_v33 = vpop.permute.xlu1 %132  ;;  %v71_v47 = vmul.f32 %v257_v42, %v39_v34 }
  0x94   :  { %v165_v58 = vadd.f32 %v133_v33, %v116_v52 }
  0x95   :  { %v117_v54 = vadd.f32 %v110_v48, %v71_v47 }
  0x96   :  { %v138_v36 = vpop.permute.xlu0 %137  ;;  %v172_v3 = vmax.f32 %v165_v58, 0.0 }
  0x97   :  { %v54_v35 = vpop.permute.xlu1 %53  ;;  %v166_v60 = vadd.f32 %v138_v36, %v117_v54 }
  0x98   :  { %v74_v4 = vmul.f32 %v257_v42, %v54_v35 }
  0x99   :  { %v173_v7 = vmax.f32 %v166_v60, 0.0 }
  0x9a   :  { %v143_v38 = vpop.permute.xlu0 %142 }
  0x9b   :  { %v167_v61 = vadd.f32 %v143_v38, %v118_v57  ;;  %v246_v38 = vlaneseq }
  0x9c   :  { %v95_v37 = vpop.permute.xlu1 %94 }
  0x9d   :  { %v113_v63 = vmul.f32 %v258_v43, %v95_v37  ;;  %v174_v8 = vmax.f32 %v167_v61, 0.0 }
  0x9e   :  { %v194_v41 = vpop.permute.xlu0 %193 }
  0x9f   :  { %v120_v10 = vadd.f32 %v113_v63, %v74_v4  ;;  %v222_v14 = vmul.f32 %v194_v41, %v173_v7  ;;  %v247_v41 = vshrl.u32 %v246_v38, 7 }
  0xa1   :  { %v59_v39 = vpop.permute.xlu1 %58 }
  0xa2   :  { %v153_v50 = vpop.permute.xlu0 %152  ;;  %v75_v0 = vmul.f32 %v257_v42, %v59_v39 }
  0xa3   :  { %v169_v16 = vadd.f32 %v153_v50, %v120_v10 }
  0xa4   :  { %v121_v11 = vadd.f32 %v114_v2, %v75_v0 }
  0xa5   :  { %v148_v40 = vpop.permute.xlu1 %147  ;;  %v176_v24 = vmax.f32 %v169_v16, 0.0 }
  0xa6   :  { %v158_v62 = vpop.permute.xlu0 %157  ;;  %v168_v5 = vadd.f32 %v148_v40, %v119_v1 }
  0xa7   :  { %v170_v21 = vadd.f32 %v158_v62, %v121_v11 }
  0xa8   :  { %v175_v17 = vmax.f32 %v168_v5, 0.0 }
  0xa9   :  { %v189_v44 = vpop.permute.xlu1 %188  ;;  %v177_v29 = vmax.f32 %v170_v21, 0.0 }
  0xaa   :  { %v221_v12 = vmul.f32 %v189_v44, %v172_v3  ;;  %v163_v15 = vpop.permute.xlu0 %162  ;;  %v248_v44 = vsub.s32 0, %v247_v41 }
  0xac   :  { %v228_v22 = vadd.f32 %v222_v14, %v221_v12 }
  0xad   :  { %v64_v51 = vpop.permute.xlu1 %63 }
  0xae   :  { %v76_v13 = vmul.f32 %v257_v42, %v64_v51  ;;  %v214_v27 = vpop.permute.xlu0 %213 }
  0xaf   :  { %v226_v32 = vmul.f32 %v214_v27, %v177_v29 }
  0xb2   :  { %v103_v59 = vpop.permute.xlu1 %102  ;;  %v244_v46 = vpop.permute.xlu0 %243 }
  0xb3   :  { %v115_v6 = vmul.f32 %v258_v43, %v103_v59  ;;  %v249_v48 = vrot.slane %v244_v46, %v248_v44 }
  0xb5   :  { %v122_v18 = vadd.f32 %v115_v6, %v76_v13 }
  0xb7   :  { %v199_v9 = vpop.permute.xlu1 %198  ;;  %v171_v26 = vadd.f32 %v163_v15, %v122_v18 }
  0xb8   :  { %v223_v19 = vmul.f32 %v199_v9, %v174_v8 }
  0xb9   :  { %v178_v34 = vmax.f32 %v171_v26, 0.0 }
  0xba   :  { %v229_v25 = vadd.f32 %v228_v22, %v223_v19 }
  0xbb   :  { %v204_v20 = vpop.permute.xlu1 %203 }
  0xbc   :  { %v224_v23 = vmul.f32 %v204_v20, %v175_v17 }
  0xbe   :  { %v230_v30 = vadd.f32 %v229_v25, %v224_v23 }
  0xbf   :  { %v209_v28 = vpop.permute.xlu1 %208 }
  0xc0   :  { %v225_v31 = vmul.f32 %v209_v28, %v176_v24 }
  0xc2   :  { %v231_v33 = vadd.f32 %v230_v30, %v225_v31 }
  0xc3   :  { %v219_v35 = vpop.permute.xlu1 %218 }
  0xc4   :  { %v227_v36 = vmul.f32 %v219_v35, %v178_v34  ;;  %v232_v37 = vadd.f32 %v231_v33, %v226_v32 }
  0xc6   :  { %v233_v39 = vadd.f32 %v232_v37, %v227_v36 }
  0xc8   :  { %v234_v40 = vrot.slane %v233_v39, 4 }
  0xca   :  { %v235_v42 = vadd.f32 %v234_v40, %v233_v39 }
  0xcc   :  { %v236_v43 = vrot.slane %v235_v42, 2 }
  0xce   :  { %v237_v45 = vadd.f32 %v236_v43, %v235_v42 }
  0xd0   :  { %v238_v47 = vrot.slane %v237_v45, 1 }
  0xd2   :  { %v239_v49 = vadd.f32 %v238_v47, %v237_v45 }
  0xd4   :  { %v250_v50 = vadd.f32 %v249_v48, %v239_v49 }
  0xd6   :  { %v251_v51 = vmax.f32 %v250_v50, 0.0 }
  0xd8   :  { %252 = vst [vmem:[%s382_s5] sm:$0x1] %v251_v51 }

</bundles_post_ra>
